<compile_context>
chip_gen: v7x
topology: tpu7x:2x2x1
jax: 0.10.0
libtpu: 0.0.40
codegen_flags: <defaults>
</compile_context>

<pallas_src>
import math

import jax
import jax.numpy as jnp
from jax.experimental import pallas as pl
from jax.experimental.pallas import tpu as pltpu


def _transpose_tile_kernel(x_ref, o_ref):
    # x_ref: (TS, TH) tile ; o_ref: (TH, TS) tile.
    # Batch dim is squeezed out, so this is a pure 2-D transpose -> XLU vxpose.
    o_ref[...] = x_ref[...].T


def _round_up(n: int, m: int) -> int:
    return ((n + m - 1) // m) * m


def _pick_tile(dim: int, target: int) -> int:
    """Pick a lane/sublane-friendly tile side: a multiple of 128 that is at
    most `target` and at most the 128-rounded dim.  Ragged dims are handled by
    cdiv grids with masked edge blocks, so the tile does NOT need to divide
    the dim (fixes the 640 -> 128-wide-tile degeneration)."""
    padded = max(128, _round_up(dim, 128))
    return min(max(128, _round_up(target, 128)), padded)


def _pallas_transpose_last2(x: jax.Array) -> jax.Array:
    """(B, S, H) -> (B, H, S) via a tiled Pallas transpose (no pad/slice)."""
    B, S, H = x.shape
    itemsize = jnp.dtype(x.dtype).itemsize

    # Keep ~4 MiB of input-tile bytes per grid step regardless of dtype so the
    # fixed per-step pipeline overhead stays amortized near the HBM roofline.
    ts = _pick_tile(S, 1024)
    th = _pick_tile(H, max(128, (1024 * 4) // itemsize))

    grid = (B, pl.cdiv(H, th), pl.cdiv(S, ts))

    # Loose (still v7x-safe) VMEM ceiling: ~4x the double-buffered in+out
    # working set, floored at 16 MiB and capped at 48 MiB.
    working = 4 * ts * th * itemsize          # 2 bufs * (in tile + out tile)
    vmem_limit = int(min(max(4 * working, 16 << 20), 48 << 20))

    return pl.pallas_call(
        _transpose_tile_kernel,
        out_shape=jax.ShapeDtypeStruct((B, H, S), x.dtype),
        grid_spec=pltpu.PrefetchScalarGridSpec(
            num_scalar_prefetch=0,
            grid=grid,
            # s innermost -> consecutive grid steps write contiguous regions
            # of the output; the strided stream is the input read.
            in_specs=[
                pl.BlockSpec((None, ts, th), lambda b, h, s: (b, s, h)),
            ],
            # TODO(synk): sweep pipeline_mode=pl.Buffered(3) on this output
            # spec (deeper writeback buffering, ~5-10% when the write DMA is
            # exposed) once depth>2 buffering is verified on the target build.
            out_specs=pl.BlockSpec((None, th, ts), lambda b, h, s: (b, h, s)),
        ),
        compiler_params=pltpu.CompilerParams(
            dimension_semantics=("parallel", "parallel", "parallel"),
            vmem_limit_bytes=vmem_limit,
        ),
    )(x)


def pallas_transpose(x: jax.Array, shape: tuple = (1, 2)) -> jax.Array:
    """Equivalent of torch.Tensor.transpose(*shape)."""
    ndim = x.ndim
    d0, d1 = sorted(d % ndim for d in shape)
    if d0 == d1:
        return x
    if ndim < 2 or (d0, d1) != (ndim - 2, ndim - 1):
        # TODO(synk): Pallas path covers the Trm.py hot path (swap of the two
        # trailing axes); other axis pairs fall back to XLA's transpose.
        return jnp.swapaxes(x, d0, d1)

    lead = x.shape[:-2]
    S, H = x.shape[-2], x.shape[-1]

    # Small-activation fallback: tiny planes (or < ~1 MiB total) are cheaper
    # through XLA's transpose than through an (8,128)-padded Pallas grid.
    nbytes = x.size * jnp.dtype(x.dtype).itemsize
    if S < 128 or H < 128 or nbytes < (1 << 20):
        return jnp.swapaxes(x, d0, d1)

    B = math.prod(lead) if lead else 1
    out3 = _pallas_transpose_last2(x.reshape(B, S, H))
    return out3.reshape(*lead, H, S)


if __name__ == "__main__":
    key = jax.random.PRNGKey(0)

    # Small Trm.py-like activation (batch, seq, hidden): served by the
    # small-shape fallback (the Pallas path would only inflate the traffic).
    B, S, H = 2, 8, 32
    x = jax.random.normal(key, (B, S, H), dtype=jnp.float32)
    out = jax.block_until_ready(pallas_transpose(x, shape=(1, 2)))
    assert out.shape == (B, H, S), out.shape
    assert out.dtype == x.dtype
    assert jnp.array_equal(out, jnp.swapaxes(x, 1, 2)), "small-path mismatch"

    # Multi-of-128 shape -> Pallas path, exact tiles, no edge masking.
    x2 = jax.random.normal(jax.random.PRNGKey(1), (2, 640, 256), dtype=jnp.float32)
    out2 = jax.block_until_ready(pallas_transpose(x2, shape=(1, 2)))
    assert out2.shape == (2, 256, 640)
    assert jnp.array_equal(out2, jnp.swapaxes(x2, 1, 2)), "aligned-path mismatch"

    # Ragged shape -> Pallas path with partial edge blocks (padded reads,
    # masked writes); no wrapper-side pad / slice round-trip anymore.
    x3 = jax.random.normal(jax.random.PRNGKey(2), (2, 333, 520), dtype=jnp.float32)
    out3 = jax.block_until_ready(pallas_transpose(x3, shape=(1, 2)))
    assert out3.shape == (2, 520, 333)
    assert jnp.array_equal(out3, jnp.swapaxes(x3, 1, 2)), "ragged-path mismatch"

    print("KERNEL_OK")
</pallas_src>

<mosaic_0001>
module attributes {stable_mosaic.version = 11 : i64} {
  func.func @_transpose_tile_kernel(%arg0: i32, %arg1: i32, %arg2: i32, %arg3: memref<1x640x256xf32, #tpu.memory_space<vmem>>, %arg4: memref<1x256x640xf32, #tpu.memory_space<vmem>>) attributes {dimension_semantics = [#tpu.dimension_semantics<parallel>, #tpu.dimension_semantics<parallel>, #tpu.dimension_semantics<parallel>], iteration_bounds = array<i64: 2, 1, 1>, scalar_prefetch = 0 : i64, scratch_operands = 0 : i64, tpu.core_type = #tpu.core_type<tc>, window_params = [{transform_indices = @transform_0, window_bounds = array<i64: 1, 640, 256>}, {transform_indices = @transform_1, window_bounds = array<i64: 1, 256, 640>}]} {
    %c0 = arith.constant 0 : index
    %c0_0 = arith.constant 0 : index
    %c0_1 = arith.constant 0 : index
    %0 = vector.load %arg3[%c0, %c0_0, %c0_1] : memref<1x640x256xf32, #tpu.memory_space<vmem>>, vector<1x640x256xf32>
    %1 = vector.shape_cast %0 : vector<1x640x256xf32> to vector<640x256xf32>
    %2 = tpu.transpose %1, [1, 0] : vector<640x256xf32> -> vector<256x640xf32>
    %c0_2 = arith.constant 0 : index
    %c0_3 = arith.constant 0 : index
    %c0_4 = arith.constant 0 : index
    %3 = vector.load %arg4[%c0_2, %c0_3, %c0_4] : memref<1x256x640xf32, #tpu.memory_space<vmem>>, vector<1x256x640xf32>
    %4 = vector.shape_cast %3 : vector<1x256x640xf32> to vector<256x640xf32>
    %5 = vector.shape_cast %2 : vector<256x640xf32> to vector<1x256x640xf32>
    tpu.vector_store %arg4[%c0_2, %c0_3, %c0_4], %5 {strides = array<i32>} : memref<1x256x640xf32, #tpu.memory_space<vmem>>, vector<1x256x640xf32>,
    return
  }
  func.func @transform_0(%arg0: i32, %arg1: i32, %arg2: i32) -> (i32, i32, i32) {
    %c0_i32 = arith.constant 0 : i32
    return %arg0, %arg2, %arg1 : i32, i32, i32
  }
  func.func @transform_1(%arg0: i32, %arg1: i32, %arg2: i32) -> (i32, i32, i32) {
    %c0_i32 = arith.constant 0 : i32
    return %arg0, %arg1, %arg2 : i32, i32, i32
  }
}

</mosaic_0001>

<bundles_post_ra>
// kernel: tpu_custom_call.1
= control target key start
LH: loop header
LB: loop body
LE: loop exit
PB: predicated region body
PF: predicated region fallthrough
CT: control target
= control target key end

     0   :  { %6 = vsyncpa [#allocation3], 0  ;;  %s1637_s0 = inlined_call_operand.hbm [shape: f32[2,640,256], index: 0, kind: input, shape index: {}]   ;;  %s1638_s1 = inlined_call_operand.hbm [shape: f32[2,256,640], index: 1, kind: output, shape index: {}]  }
   0x1   :  { %8 = vsyncpa [#allocation3 + $0x1], 0 }
   0x2   :  { %9 = vsyncpa [#allocation4], 0 }
   0x3   :  { %11 = vsyncpa [#allocation4 + $0x1], 0  ;;  %s1133_s6 = smov 0   ;;  %s1135_s7 = smov 0  }
   0x4   :  { %s1137_s8 = smov 0   ;;  %s1139_s9 = smov 0  }
   0x5   :  { %s1141_s10 = smov 0   ;;  %s1143_s11 = smov 0  }
   0x6 LB: > { %s924_s12 = sadd.s32 4294967295, %s1115_s11   ;;  %s925_s13 = sadd.s32 4294967294, %s1115_s11   ;;  %s1115_s11 = sphi %s1143_s11, %s17_s11   ;;  %s1111_s10 = sphi %s1141_s10, %s1653_s10   ;;  %s1107_s9 = sphi %s1139_s9, %s1652_s9   ;;  %s1103_s8 = sphi %s1137_s8, %s1651_s8   ;;  %s1099_s7 = sphi %s1135_s7, %s1650_s7   ;;  %s1095_s6 = sphi %s1133_s6, %s1649_s6  }
   0x7   : > { %s36_s14 = sadd.s32 1, %s1111_s10  ;;  %s47_s15 = sadd.s32 1, %s1103_s8 }
   0x8   : > { %p38_p0 = scmp.ge.s32.totalorder %s36_s14, 2  ;;  %p54_p1 = scmp.ne.s32.totalorder %s1103_s8, %s1099_s7 }
   0x9   : > { %p55_p2 = scmp.eq.s32.totalorder %s1115_s11, 0  ;;  %p60_p3 = scmp.ne.s32.totalorder %s1099_s7, %s1095_s6 }
   0xa   : > { %s1655_s14 = smov (%p38_p0, %s36_s14), 0  ;;  %p61_p5 = scmp.eq.s32.totalorder %s924_s12, 0 }
   0xb   : > { %p1174_p4 = por %p55_p2, %p54_p1  ;;  %s40_s17 = ssub.s32 %s1111_s10, %s1655_s14 }
   0xc   : > { %p88_p6 = scmp.eq.s32.totalorder %s924_s12, 1  ;;  %p45_p7 = scmp.eq.s32.totalorder %s40_s17, 0 }
   0xd   : > { %p1180_p8 = por %p61_p5, %p60_p3  ;;  %p94_p10 = scmp.eq.s32.totalorder %s925_s13, 1 }
   0xe   : > { %p1184_p9 = por %p88_p6, %p54_p1  ;;  %p949_p13 = scmp.lt.s32.totalorder %s1115_s11, 2 }
   0xf   : > { %s1189_s20 = scalar_select %p45_p7, %s1103_s8, %s47_s15  }
  0x10   : > { %s1642_s19 = scalar_select %p1184_p9, 1, 0 }
  0x11   : > { %p1191_p11 = por %p94_p10, %p60_p3  ;;  %s114_s22 = sand.u32 1, %s1103_s8  }
  0x12   : > { %s933_s23 = smul.u32 1280, %s114_s22  ;;  %p1201_p0 = pnand %p949_p13, %p1174_p4 }
  0x13   : > { %s1643_s21 = scalar_select %p1191_p11, 1, 0 }
  0x14   : > { %s934_s24 = smul.u32 20480, %s1111_s10  ;;  %s118_s29 = scalar_lea.vmem [#allocation2], %s933_s23 }
  0x15   : > { %s130_s30 = sshll.u32 %s118_s29, 4  ;;  %s1213_s2 = scalar_lea.sflag [#allocation3], %s114_s22  ;;  %s1210_s30 = int_to_ptr.vmem [resolvable:$true] %s130_s30 }
  0x16   : > { %s1208_s28 = scalar_lea.hbm %s1637_s0, %s934_s24  ;;  %p1005_p3 = pneg %p1201_p0 }
  0x17   : > { %s1003_s3 = scalar_lea.hbm %s1208_s28, 20480  ;;  %s1008_s12 = scalar_lea.hbm %s1637_s0, 40960 }
  0x18   : > { %p1004_p2 = scmp.ne.s32.totalorder %s1208_s28, %s1003_s3  ;;  %p1009_p6 = scmp.lt.u32.totalorder %s1208_s28, %s1637_s0 }
  0x19   : > { %p1010_p7 = scmp.lt.u32.totalorder %s1008_s12, %s1003_s3  ;;  %p1012_p13 = scmp.lt.u32.totalorder %s1003_s3, %s1208_s28 }
  0x1a   : > { %p1006_p4 = pnand %p1005_p3, %p1004_p2 }
  0x1b   : > { %p1011_p10 = por %p1010_p7, %p1009_p6 }
  0x1c   : > { %p1007_p5 = pneg %p1006_p4 }
  0x1d   : > { %p1013_p12 = por %p1012_p13, %p1011_p10 }
  0x1f   : > { %p1014_p1 = pnand %p1013_p12, %p1007_p5 }
  0x21   : > { %1017 = shalt.err (!%p1014_p1)
}
  0x22   : > { %s1018_s16 = scalar_lea.vmem %s1210_s30, 20480  ;;  %s1117_s17 = smov [#allocation2]  }
  0x23   : > { %p1019_p2 = scmp.ne.s32.totalorder %s1210_s30, %s1018_s16  ;;  %s1023_s22 = sshll.u32 %s1117_s17, 4  ;;  %s1024_s22 = int_to_ptr.vmem [resolvable:$false] %s1023_s22 }
  0x24   : > { %s1025_s23 = scalar_lea.vmem %s1024_s22, 40960  ;;  %p1026_p9 = scmp.lt.s32.totalorder %s1210_s30, %s1024_s22 }
  0x25   : > { %p1021_p4 = pnand %p1019_p2, %p1005_p3  ;;  %p1027_p6 = scmp.lt.s32.totalorder %s1025_s23, %s1018_s16 }
  0x27   : > { %p1022_p11 = pneg %p1021_p4  ;;  %p1028_p7 = por %p1027_p6, %p1026_p9 }
  0x29   : > { %p1029_p10 = pnand %p1028_p7, %p1022_p11 }
  0x2b   : > { %1032 = shalt.err (!%p1029_p10)
}
  0x2c   : > { %s1118_s24 = smov 256   ;;  %s1119_s26 = smov 16  }
  0x2d   : > { %944 = dma.hbm_to_vmem [thread:$0]  (!%p1201_p0), %s1208_s28, 20480, %s1210_s30, %s1213_s2, %s1118_s24, %s1118_s24, %s1119_s26  }
  0x2e   : > { %p138_p12 = scmp.lt.s32.totalorder %s1115_s11, 3  ;;  %p1645_p1 = scmp.ge.s32.totalorder %s1115_s11, 1 }
  0x30   : > { %p139_p3 = pnand %p1645_p1, %p138_p12 }
  0x31   : > { %s1245_s27 = sand.u32 (!%p139_p3), 1, %s1099_s7  }
  0x32   : > { %142 = sbr.rel (%p139_p3) target bundleno = 519 (0x207), region = 24  ;;  %s145_s3 = scalar_lea.sflag (!%p139_p3), [#allocation3], %s1245_s27 }
  0x33   : > { %s935_s29 = smul.u32 (!%p139_p3), 1280, %s1245_s27 }
  0x35   : > { %s1251_s4 = scalar_lea.vmem (!%p139_p3), [#allocation2], %s935_s29 }
  0x39   : > { %1086 = dma.done.wait (%p1180_p8), %s145_s3, 20480  }
  0x3a   : > { %1088 = vsyncadd (%p1180_p8), %s145_s3, 4294946816  ;;  %v172_v0 = vld [vmem:[%s1251_s4 + $0x8] sm:$0xff]  ;;  %v171_v1 = vld [vmem:[%s1251_s4] sm:$0xff]  ;;  %s1325_s18 = scalar_lea.vmem [#allocation5], %s935_s29  ;;  %s936_s25 = smul.u32 20480, %s1107_s9 }
  0x3b   : > { %363 = vxpose.xlu1.b32.start [1/16] %v172_v0, 128  ;;  %331 = vxpose.xlu0.b32.start [1/16] %v171_v1, 128  ;;  %v174_v2 = vld [vmem:[%s1251_s4 + $0x18] sm:$0xff]  ;;  %v173_v3 = vld [vmem:[%s1251_s4 + $0x10] sm:$0xff]  ;;  %v176_v4 = vld [vmem:[%s1251_s4 + $0x28] sm:$0xff]  ;;  %s830_s28 = sshll.u32 %s1325_s18, 4  ;;  %s812_s9 = scalar_lea.sflag [#allocation4], %s1245_s27  ;;  %s1586_s28 = int_to_ptr.vmem [resolvable:$true] %s830_s28 }
  0x3c   : > { %v175_v5 = vld [vmem:[%s1251_s4 + $0x20] sm:$0xff]  ;;  %v178_v6 = vld [vmem:[%s1251_s4 + $0x38] sm:$0xff]  ;;  %v177_v7 = vld [vmem:[%s1251_s4 + $0x30] sm:$0xff]  ;;  %s1584_s5 = scalar_lea.hbm %s1638_s1, %s936_s25  ;;  %s1033_s12 = scalar_lea.vmem %s1586_s28, 20480 }
  0x3d   : > { %v180_v8 = vld [vmem:[%s1251_s4 + $0x48] sm:$0xff]  ;;  %v179_v9 = vld [vmem:[%s1251_s4 + $0x40] sm:$0xff]  ;;  %v182_v10 = vld [vmem:[%s1251_s4 + $0x58] sm:$0xff]  ;;  %p1034_p8 = scmp.ne.s32.totalorder %s1586_s28, %s1033_s12  ;;  %p1646_p9 = scmp.ne.s32.totalorder %s1642_s19, 0 }
  0x3e   : > { %v181_v11 = vld [vmem:[%s1251_s4 + $0x50] sm:$0xff]  ;;  %v184_v12 = vld [vmem:[%s1251_s4 + $0x68] sm:$0xff]  ;;  %v183_v13 = vld [vmem:[%s1251_s4 + $0x60] sm:$0xff]  ;;  %s1120_s13 = smov [#allocation5]  }
  0x3f   : > { %364 = vxpose.xlu1.b32.cont [2/16] %v174_v2, 128  ;;  %332 = vxpose.xlu0.b32.cont [2/16] %v173_v3, 128  ;;  %v186_v14 = vld [vmem:[%s1251_s4 + $0x78] sm:$0xff]  ;;  %v185_v15 = vld [vmem:[%s1251_s4 + $0x70] sm:$0xff]  ;;  %v188_v16 = vld [vmem:[%s1251_s4 + $0x88] sm:$0xff]  ;;  %p1035_p11 = pnand %p1034_p8, %p1646_p9  ;;  %s1037_s15 = sshll.u32 %s1120_s13, 4  ;;  %s1038_s15 = int_to_ptr.vmem [resolvable:$false] %s1037_s15 }
  0x40   : > { %v187_v17 = vld [vmem:[%s1251_s4 + $0x80] sm:$0xff]  ;;  %v190_v18 = vld [vmem:[%s1251_s4 + $0x98] sm:$0xff]  ;;  %v189_v19 = vld [vmem:[%s1251_s4 + $0x90] sm:$0xff]  ;;  %s1039_s16 = scalar_lea.vmem %s1038_s15, 40960  ;;  %p1040_p5 = scmp.lt.s32.totalorder %s1586_s28, %s1038_s15 }
  0x41   : > { %v192_v20 = vld [vmem:[%s1251_s4 + $0xa8] sm:$0xff]  ;;  %v191_v21 = vld [vmem:[%s1251_s4 + $0xa0] sm:$0xff]  ;;  %v194_v22 = vld [vmem:[%s1251_s4 + $0xb8] sm:$0xff]  ;;  %p1036_p0 = pneg %p1035_p11  ;;  %p1041_p13 = scmp.lt.s32.totalorder %s1039_s16, %s1033_s12 }
  0x42   : > { %v193_v23 = vld [vmem:[%s1251_s4 + $0xb0] sm:$0xff]  ;;  %v196_v24 = vld [vmem:[%s1251_s4 + $0xc8] sm:$0xff]  ;;  %v195_v25 = vld [vmem:[%s1251_s4 + $0xc0] sm:$0xff] }
  0x43   : > { %365 = vxpose.xlu1.b32.cont [3/16] %v176_v4, 128  ;;  %333 = vxpose.xlu0.b32.cont [3/16] %v175_v5, 128  ;;  %v198_v26 = vld [vmem:[%s1251_s4 + $0xd8] sm:$0xff]  ;;  %v197_v27 = vld [vmem:[%s1251_s4 + $0xd0] sm:$0xff]  ;;  %v200_v28 = vld [vmem:[%s1251_s4 + $0xe8] sm:$0xff]  ;;  %p1042_p2 = por %p1041_p13, %p1040_p5 }
  0x44   : > { %v199_v29 = vld [vmem:[%s1251_s4 + $0xe0] sm:$0xff]  ;;  %v202_v30 = vld [vmem:[%s1251_s4 + $0xf8] sm:$0xff]  ;;  %v201_v31 = vld [vmem:[%s1251_s4 + $0xf0] sm:$0xff] }
  0x45   : > { %v204_v32 = vld [vmem:[%s1251_s4 + $0x108] sm:$0xff]  ;;  %v203_v33 = vld [vmem:[%s1251_s4 + $0x100] sm:$0xff]  ;;  %v206_v34 = vld [vmem:[%s1251_s4 + $0x118] sm:$0xff]  ;;  %p1043_p4 = pnand %p1042_p2, %p1036_p0 }
  0x46   : > { %v205_v35 = vld [vmem:[%s1251_s4 + $0x110] sm:$0xff]  ;;  %v208_v36 = vld [vmem:[%s1251_s4 + $0x128] sm:$0xff]  ;;  %v207_v37 = vld [vmem:[%s1251_s4 + $0x120] sm:$0xff] }
  0x47   : > { %366 = vxpose.xlu1.b32.cont [4/16] %v178_v6, 128  ;;  %334 = vxpose.xlu0.b32.cont [4/16] %v177_v7, 128  ;;  %v210_v38 = vld [vmem:[%s1251_s4 + $0x138] sm:$0xff]  ;;  %v209_v39 = vld [vmem:[%s1251_s4 + $0x130] sm:$0xff]  ;;  %v212_v40 = vld [vmem:[%s1251_s4 + $0x148] sm:$0xff] }
  0x48   : > { %v211_v41 = vld [vmem:[%s1251_s4 + $0x140] sm:$0xff]  ;;  %v214_v42 = vld [vmem:[%s1251_s4 + $0x158] sm:$0xff]  ;;  %v213_v43 = vld [vmem:[%s1251_s4 + $0x150] sm:$0xff] }
  0x49   : > { %v216_v44 = vld [vmem:[%s1251_s4 + $0x168] sm:$0xff]  ;;  %v215_v45 = vld [vmem:[%s1251_s4 + $0x160] sm:$0xff]  ;;  %v218_v46 = vld [vmem:[%s1251_s4 + $0x178] sm:$0xff] }
  0x4a   : > { %v217_v47 = vld [vmem:[%s1251_s4 + $0x170] sm:$0xff]  ;;  %v220_v48 = vld [vmem:[%s1251_s4 + $0x188] sm:$0xff]  ;;  %v219_v49 = vld [vmem:[%s1251_s4 + $0x180] sm:$0xff] }
  0x4b   : > { %367 = vxpose.xlu1.b32.cont [5/16] %v180_v8, 128  ;;  %335 = vxpose.xlu0.b32.cont [5/16] %v179_v9, 128  ;;  %v222_v50 = vld [vmem:[%s1251_s4 + $0x198] sm:$0xff]  ;;  %v221_v51 = vld [vmem:[%s1251_s4 + $0x190] sm:$0xff]  ;;  %v224_v52 = vld [vmem:[%s1251_s4 + $0x1a8] sm:$0xff] }
  0x4c   : > { %v223_v53 = vld [vmem:[%s1251_s4 + $0x1a0] sm:$0xff]  ;;  %v226_v54 = vld [vmem:[%s1251_s4 + $0x1b8] sm:$0xff]  ;;  %v225_v55 = vld [vmem:[%s1251_s4 + $0x1b0] sm:$0xff] }
  0x4d   : > { %v228_v56 = vld [vmem:[%s1251_s4 + $0x1c8] sm:$0xff]  ;;  %v227_v57 = vld [vmem:[%s1251_s4 + $0x1c0] sm:$0xff]  ;;  %v230_v58 = vld [vmem:[%s1251_s4 + $0x1d8] sm:$0xff] }
  0x4e   : > { %v229_v59 = vld [vmem:[%s1251_s4 + $0x1d0] sm:$0xff]  ;;  %v232_v60 = vld [vmem:[%s1251_s4 + $0x1e8] sm:$0xff]  ;;  %v231_v61 = vld [vmem:[%s1251_s4 + $0x1e0] sm:$0xff] }
  0x4f   : > { %368 = vxpose.xlu1.b32.cont [6/16] %v182_v10, 128  ;;  %336 = vxpose.xlu0.b32.cont [6/16] %v181_v11, 128  ;;  %v234_v62 = vld [vmem:[%s1251_s4 + $0x1f8] sm:$0xff]  ;;  %v233_v63 = vld [vmem:[%s1251_s4 + $0x1f0] sm:$0xff]  ;;  %v236_v0 = vld [vmem:[%s1251_s4 + $0x208] sm:$0xff] }
  0x50   : > { %v235_v1 = vld [vmem:[%s1251_s4 + $0x200] sm:$0xff]  ;;  %v238_v4 = vld [vmem:[%s1251_s4 + $0x218] sm:$0xff]  ;;  %v237_v5 = vld [vmem:[%s1251_s4 + $0x210] sm:$0xff] }
  0x51   : > { %v240_v8 = vld [vmem:[%s1251_s4 + $0x228] sm:$0xff]  ;;  %v239_v9 = vld [vmem:[%s1251_s4 + $0x220] sm:$0xff] }
  0x53   : > { %369 = vxpose.xlu1.b32.cont [7/16] %v184_v12, 128  ;;  %337 = vxpose.xlu0.b32.cont [7/16] %v183_v13, 128  ;;  %v242_v12 = vld [vmem:[%s1251_s4 + $0x238] sm:$0xff]  ;;  %v241_v13 = vld [vmem:[%s1251_s4 + $0x230] sm:$0xff] }
  0x57   : > { %370 = vxpose.xlu1.b32.cont [8/16] %v186_v14, 128  ;;  %338 = vxpose.xlu0.b32.cont [8/16] %v185_v15, 128 }
  0x5b   : > { %371 = vxpose.xlu1.b32.cont [9/16] %v188_v16, 128  ;;  %339 = vxpose.xlu0.b32.cont [9/16] %v187_v17, 128  ;;  %v244_v16 = vld [vmem:[%s1251_s4 + $0x248] sm:$0xff]  ;;  %v243_v17 = vld [vmem:[%s1251_s4 + $0x240] sm:$0xff] }
  0x5f   : > { %372 = vxpose.xlu1.b32.cont [10/16] %v190_v18, 128  ;;  %340 = vxpose.xlu0.b32.cont [10/16] %v189_v19, 128 }
  0x63   : > { %373 = vxpose.xlu1.b32.cont [11/16] %v192_v20, 128  ;;  %341 = vxpose.xlu0.b32.cont [11/16] %v191_v21, 128  ;;  %v246_v20 = vld [vmem:[%s1251_s4 + $0x258] sm:$0xff]  ;;  %v245_v21 = vld [vmem:[%s1251_s4 + $0x250] sm:$0xff] }
  0x67   : > { %374 = vxpose.xlu1.b32.cont [12/16] %v194_v22, 128  ;;  %342 = vxpose.xlu0.b32.cont [12/16] %v193_v23, 128 }
  0x6b   : > { %375 = vxpose.xlu1.b32.cont [13/16] %v196_v24, 128  ;;  %343 = vxpose.xlu0.b32.cont [13/16] %v195_v25, 128  ;;  %v248_v24 = vld [vmem:[%s1251_s4 + $0x268] sm:$0xff]  ;;  %v247_v25 = vld [vmem:[%s1251_s4 + $0x260] sm:$0xff] }
  0x6f   : > { %376 = vxpose.xlu1.b32.cont [14/16] %v198_v26, 128  ;;  %344 = vxpose.xlu0.b32.cont [14/16] %v197_v27, 128 }
  0x73   : > { %377 = vxpose.xlu1.b32.cont [15/16] %v200_v28, 128  ;;  %345 = vxpose.xlu0.b32.cont [15/16] %v199_v29, 128  ;;  %v250_v28 = vld [vmem:[%s1251_s4 + $0x278] sm:$0xff]  ;;  %v249_v29 = vld [vmem:[%s1251_s4 + $0x270] sm:$0xff] }
  0x77   : > { %378 = vxpose.xlu1.b32.end [16/16] %v202_v30, 128  ;;  %346 = vxpose.xlu0.b32.end [16/16] %v201_v31, 128 }
  0x7b   : > { %427 = vxpose.xlu1.b32.start [1/16] %v204_v32, 128  ;;  %395 = vxpose.xlu0.b32.start [1/16] %v203_v33, 128  ;;  %v252_v32 = vld [vmem:[%s1251_s4 + $0x288] sm:$0xff]  ;;  %v251_v33 = vld [vmem:[%s1251_s4 + $0x280] sm:$0xff] }
  0x7f   : > { %428 = vxpose.xlu1.b32.cont [2/16] %v206_v34, 128  ;;  %396 = vxpose.xlu0.b32.cont [2/16] %v205_v35, 128 }
  0x83   : > { %429 = vxpose.xlu1.b32.cont [3/16] %v208_v36, 128  ;;  %397 = vxpose.xlu0.b32.cont [3/16] %v207_v37, 128  ;;  %v254_v36 = vld [vmem:[%s1251_s4 + $0x298] sm:$0xff]  ;;  %v253_v37 = vld [vmem:[%s1251_s4 + $0x290] sm:$0xff] }
  0x87   : > { %430 = vxpose.xlu1.b32.cont [4/16] %v210_v38, 128  ;;  %398 = vxpose.xlu0.b32.cont [4/16] %v209_v39, 128 }
  0x8b   : > { %431 = vxpose.xlu1.b32.cont [5/16] %v212_v40, 128  ;;  %399 = vxpose.xlu0.b32.cont [5/16] %v211_v41, 128  ;;  %v256_v40 = vld [vmem:[%s1251_s4 + $0x2a8] sm:$0xff]  ;;  %v255_v41 = vld [vmem:[%s1251_s4 + $0x2a0] sm:$0xff] }
  0x8f   : > { %432 = vxpose.xlu1.b32.cont [6/16] %v214_v42, 128  ;;  %400 = vxpose.xlu0.b32.cont [6/16] %v213_v43, 128 }
  0x93   : > { %433 = vxpose.xlu1.b32.cont [7/16] %v216_v44, 128  ;;  %401 = vxpose.xlu0.b32.cont [7/16] %v215_v45, 128  ;;  %v258_v44 = vld [vmem:[%s1251_s4 + $0x2b8] sm:$0xff]  ;;  %v257_v45 = vld [vmem:[%s1251_s4 + $0x2b0] sm:$0xff] }
  0x97   : > { %434 = vxpose.xlu1.b32.cont [8/16] %v218_v46, 128  ;;  %402 = vxpose.xlu0.b32.cont [8/16] %v217_v47, 128 }
  0x9b   : > { %435 = vxpose.xlu1.b32.cont [9/16] %v220_v48, 128  ;;  %403 = vxpose.xlu0.b32.cont [9/16] %v219_v49, 128  ;;  %v260_v48 = vld [vmem:[%s1251_s4 + $0x2c8] sm:$0xff]  ;;  %v259_v49 = vld [vmem:[%s1251_s4 + $0x2c0] sm:$0xff] }
  0x9f   : > { %436 = vxpose.xlu1.b32.cont [10/16] %v222_v50, 128  ;;  %404 = vxpose.xlu0.b32.cont [10/16] %v221_v51, 128 }
  0xa3   : > { %437 = vxpose.xlu1.b32.cont [11/16] %v224_v52, 128  ;;  %405 = vxpose.xlu0.b32.cont [11/16] %v223_v53, 128  ;;  %v262_v52 = vld [vmem:[%s1251_s4 + $0x2d8] sm:$0xff]  ;;  %v261_v53 = vld [vmem:[%s1251_s4 + $0x2d0] sm:$0xff] }
  0xa7   : > { %438 = vxpose.xlu1.b32.cont [12/16] %v226_v54, 128  ;;  %406 = vxpose.xlu0.b32.cont [12/16] %v225_v55, 128 }
  0xab   : > { %439 = vxpose.xlu1.b32.cont [13/16] %v228_v56, 128  ;;  %407 = vxpose.xlu0.b32.cont [13/16] %v227_v57, 128  ;;  %v264_v56 = vld [vmem:[%s1251_s4 + $0x2e8] sm:$0xff]  ;;  %v263_v57 = vld [vmem:[%s1251_s4 + $0x2e0] sm:$0xff] }
  0xaf   : > { %440 = vxpose.xlu1.b32.cont [14/16] %v230_v58, 128  ;;  %408 = vxpose.xlu0.b32.cont [14/16] %v229_v59, 128 }
  0xb3   : > { %441 = vxpose.xlu1.b32.cont [15/16] %v232_v60, 128  ;;  %409 = vxpose.xlu0.b32.cont [15/16] %v231_v61, 128  ;;  %v266_v60 = vld [vmem:[%s1251_s4 + $0x2f8] sm:$0xff]  ;;  %v265_v61 = vld [vmem:[%s1251_s4 + $0x2f0] sm:$0xff] }
  0xb7   : > { %442 = vxpose.xlu1.b32.end [16/16] %v234_v62, 128  ;;  %410 = vxpose.xlu0.b32.end [16/16] %v233_v63, 128 }
  0xbb   : > { %491 = vxpose.xlu1.b32.start [1/16] %v236_v0, 128  ;;  %v379_v2 = vpop.trf.xlu1  ;;  %459 = vxpose.xlu0.b32.start [1/16] %v235_v1, 128  ;;  %v347_v3 = vpop.trf.xlu0  ;;  %v268_v0 = vld [vmem:[%s1251_s4 + $0x308] sm:$0xff]  ;;  %v267_v1 = vld [vmem:[%s1251_s4 + $0x300] sm:$0xff] }
  0xbc   : > { %731 = vst [vmem:[%s1325_s18 + $0x280] sm:$0xff] %v379_v2  ;;  %651 = vst [vmem:[%s1325_s18] sm:$0xff] %v347_v3 }
  0xbf   : > { %492 = vxpose.xlu1.b32.cont [2/16] %v238_v4, 128  ;;  %v380_v6 = vpop.trf.xlu1  ;;  %460 = vxpose.xlu0.b32.cont [2/16] %v237_v5, 128  ;;  %v348_v7 = vpop.trf.xlu0  ;;  %v270_v4 = vld [vmem:[%s1251_s4 + $0x318] sm:$0xff]  ;;  %v269_v5 = vld [vmem:[%s1251_s4 + $0x310] sm:$0xff] }
  0xc0   : > { %736 = vst [vmem:[%s1325_s18 + $0x2a8] sm:$0xff] %v380_v6  ;;  %656 = vst [vmem:[%s1325_s18 + $0x28] sm:$0xff] %v348_v7 }
  0xc3   : > { %493 = vxpose.xlu1.b32.cont [3/16] %v240_v8, 128  ;;  %v381_v10 = vpop.trf.xlu1  ;;  %461 = vxpose.xlu0.b32.cont [3/16] %v239_v9, 128  ;;  %v349_v11 = vpop.trf.xlu0  ;;  %v272_v8 = vld [vmem:[%s1251_s4 + $0x328] sm:$0xff]  ;;  %v271_v9 = vld [vmem:[%s1251_s4 + $0x320] sm:$0xff] }
  0xc4   : > { %741 = vst [vmem:[%s1325_s18 + $0x2d0] sm:$0xff] %v381_v10  ;;  %661 = vst [vmem:[%s1325_s18 + $0x50] sm:$0xff] %v349_v11 }
  0xc7   : > { %494 = vxpose.xlu1.b32.cont [4/16] %v242_v12, 128  ;;  %v382_v14 = vpop.trf.xlu1  ;;  %462 = vxpose.xlu0.b32.cont [4/16] %v241_v13, 128  ;;  %v350_v15 = vpop.trf.xlu0  ;;  %v274_v12 = vld [vmem:[%s1251_s4 + $0x338] sm:$0xff]  ;;  %v273_v13 = vld [vmem:[%s1251_s4 + $0x330] sm:$0xff] }
  0xc8   : > { %746 = vst [vmem:[%s1325_s18 + $0x2f8] sm:$0xff] %v382_v14  ;;  %666 = vst [vmem:[%s1325_s18 + $0x78] sm:$0xff] %v350_v15 }
  0xcb   : > { %495 = vxpose.xlu1.b32.cont [5/16] %v244_v16, 128  ;;  %v383_v18 = vpop.trf.xlu1  ;;  %463 = vxpose.xlu0.b32.cont [5/16] %v243_v17, 128  ;;  %v351_v19 = vpop.trf.xlu0  ;;  %v276_v16 = vld [vmem:[%s1251_s4 + $0x348] sm:$0xff]  ;;  %v275_v17 = vld [vmem:[%s1251_s4 + $0x340] sm:$0xff] }
  0xcc   : > { %751 = vst [vmem:[%s1325_s18 + $0x320] sm:$0xff] %v383_v18  ;;  %671 = vst [vmem:[%s1325_s18 + $0xa0] sm:$0xff] %v351_v19 }
  0xcf   : > { %496 = vxpose.xlu1.b32.cont [6/16] %v246_v20, 128  ;;  %v384_v22 = vpop.trf.xlu1  ;;  %464 = vxpose.xlu0.b32.cont [6/16] %v245_v21, 128  ;;  %v352_v23 = vpop.trf.xlu0  ;;  %v278_v20 = vld [vmem:[%s1251_s4 + $0x358] sm:$0xff]  ;;  %v277_v21 = vld [vmem:[%s1251_s4 + $0x350] sm:$0xff] }
  0xd0   : > { %756 = vst [vmem:[%s1325_s18 + $0x348] sm:$0xff] %v384_v22  ;;  %676 = vst [vmem:[%s1325_s18 + $0xc8] sm:$0xff] %v352_v23 }
  0xd3   : > { %497 = vxpose.xlu1.b32.cont [7/16] %v248_v24, 128  ;;  %v385_v26 = vpop.trf.xlu1  ;;  %465 = vxpose.xlu0.b32.cont [7/16] %v247_v25, 128  ;;  %v353_v27 = vpop.trf.xlu0  ;;  %v280_v24 = vld [vmem:[%s1251_s4 + $0x368] sm:$0xff]  ;;  %v279_v25 = vld [vmem:[%s1251_s4 + $0x360] sm:$0xff] }
  0xd4   : > { %761 = vst [vmem:[%s1325_s18 + $0x370] sm:$0xff] %v385_v26  ;;  %681 = vst [vmem:[%s1325_s18 + $0xf0] sm:$0xff] %v353_v27 }
  0xd7   : > { %498 = vxpose.xlu1.b32.cont [8/16] %v250_v28, 128  ;;  %v386_v30 = vpop.trf.xlu1  ;;  %466 = vxpose.xlu0.b32.cont [8/16] %v249_v29, 128  ;;  %v354_v31 = vpop.trf.xlu0  ;;  %v282_v28 = vld [vmem:[%s1251_s4 + $0x378] sm:$0xff]  ;;  %v281_v29 = vld [vmem:[%s1251_s4 + $0x370] sm:$0xff] }
  0xd8   : > { %766 = vst [vmem:[%s1325_s18 + $0x398] sm:$0xff] %v386_v30  ;;  %686 = vst [vmem:[%s1325_s18 + $0x118] sm:$0xff] %v354_v31 }
  0xdb   : > { %499 = vxpose.xlu1.b32.cont [9/16] %v252_v32, 128  ;;  %v387_v34 = vpop.trf.xlu1  ;;  %467 = vxpose.xlu0.b32.cont [9/16] %v251_v33, 128  ;;  %v355_v35 = vpop.trf.xlu0  ;;  %v284_v32 = vld [vmem:[%s1251_s4 + $0x388] sm:$0xff]  ;;  %v283_v33 = vld [vmem:[%s1251_s4 + $0x380] sm:$0xff] }
  0xdc   : > { %771 = vst [vmem:[%s1325_s18 + $0x3c0] sm:$0xff] %v387_v34  ;;  %691 = vst [vmem:[%s1325_s18 + $0x140] sm:$0xff] %v355_v35 }
  0xdf   : > { %500 = vxpose.xlu1.b32.cont [10/16] %v254_v36, 128  ;;  %v388_v38 = vpop.trf.xlu1  ;;  %468 = vxpose.xlu0.b32.cont [10/16] %v253_v37, 128  ;;  %v356_v39 = vpop.trf.xlu0  ;;  %v286_v36 = vld [vmem:[%s1251_s4 + $0x398] sm:$0xff]  ;;  %v285_v37 = vld [vmem:[%s1251_s4 + $0x390] sm:$0xff] }
  0xe0   : > { %776 = vst [vmem:[%s1325_s18 + $0x3e8] sm:$0xff] %v388_v38  ;;  %696 = vst [vmem:[%s1325_s18 + $0x168] sm:$0xff] %v356_v39 }
  0xe3   : > { %501 = vxpose.xlu1.b32.cont [11/16] %v256_v40, 128  ;;  %v389_v42 = vpop.trf.xlu1  ;;  %469 = vxpose.xlu0.b32.cont [11/16] %v255_v41, 128  ;;  %v357_v43 = vpop.trf.xlu0  ;;  %v288_v40 = vld [vmem:[%s1251_s4 + $0x3a8] sm:$0xff]  ;;  %v287_v41 = vld [vmem:[%s1251_s4 + $0x3a0] sm:$0xff] }
  0xe4   : > { %781 = vst [vmem:[%s1325_s18 + $0x410] sm:$0xff] %v389_v42  ;;  %701 = vst [vmem:[%s1325_s18 + $0x190] sm:$0xff] %v357_v43 }
  0xe7   : > { %502 = vxpose.xlu1.b32.cont [12/16] %v258_v44, 128  ;;  %v390_v46 = vpop.trf.xlu1  ;;  %470 = vxpose.xlu0.b32.cont [12/16] %v257_v45, 128  ;;  %v358_v47 = vpop.trf.xlu0  ;;  %v290_v44 = vld [vmem:[%s1251_s4 + $0x3b8] sm:$0xff]  ;;  %v289_v45 = vld [vmem:[%s1251_s4 + $0x3b0] sm:$0xff] }
  0xe8   : > { %786 = vst [vmem:[%s1325_s18 + $0x438] sm:$0xff] %v390_v46  ;;  %706 = vst [vmem:[%s1325_s18 + $0x1b8] sm:$0xff] %v358_v47 }
  0xeb   : > { %503 = vxpose.xlu1.b32.cont [13/16] %v260_v48, 128  ;;  %v391_v50 = vpop.trf.xlu1  ;;  %471 = vxpose.xlu0.b32.cont [13/16] %v259_v49, 128  ;;  %v359_v51 = vpop.trf.xlu0  ;;  %v292_v48 = vld [vmem:[%s1251_s4 + $0x3c8] sm:$0xff]  ;;  %v291_v49 = vld [vmem:[%s1251_s4 + $0x3c0] sm:$0xff] }
  0xec   : > { %791 = vst [vmem:[%s1325_s18 + $0x460] sm:$0xff] %v391_v50  ;;  %711 = vst [vmem:[%s1325_s18 + $0x1e0] sm:$0xff] %v359_v51 }
  0xef   : > { %504 = vxpose.xlu1.b32.cont [14/16] %v262_v52, 128  ;;  %v392_v54 = vpop.trf.xlu1  ;;  %472 = vxpose.xlu0.b32.cont [14/16] %v261_v53, 128  ;;  %v360_v55 = vpop.trf.xlu0  ;;  %v294_v52 = vld [vmem:[%s1251_s4 + $0x3d8] sm:$0xff]  ;;  %v293_v53 = vld [vmem:[%s1251_s4 + $0x3d0] sm:$0xff] }
  0xf0   : > { %796 = vst [vmem:[%s1325_s18 + $0x488] sm:$0xff] %v392_v54  ;;  %716 = vst [vmem:[%s1325_s18 + $0x208] sm:$0xff] %v360_v55 }
  0xf3   : > { %505 = vxpose.xlu1.b32.cont [15/16] %v264_v56, 128  ;;  %v393_v58 = vpop.trf.xlu1  ;;  %473 = vxpose.xlu0.b32.cont [15/16] %v263_v57, 128  ;;  %v361_v59 = vpop.trf.xlu0  ;;  %v296_v56 = vld [vmem:[%s1251_s4 + $0x3e8] sm:$0xff]  ;;  %v295_v57 = vld [vmem:[%s1251_s4 + $0x3e0] sm:$0xff] }
  0xf4   : > { %801 = vst [vmem:[%s1325_s18 + $0x4b0] sm:$0xff] %v393_v58  ;;  %721 = vst [vmem:[%s1325_s18 + $0x230] sm:$0xff] %v361_v59 }
  0xf7   : > { %506 = vxpose.xlu1.b32.end [16/16] %v266_v60, 128  ;;  %v394_v62 = vpop.trf.xlu1  ;;  %474 = vxpose.xlu0.b32.end [16/16] %v265_v61, 128  ;;  %v362_v63 = vpop.trf.xlu0  ;;  %v298_v60 = vld [vmem:[%s1251_s4 + $0x3f8] sm:$0xff]  ;;  %v297_v61 = vld [vmem:[%s1251_s4 + $0x3f0] sm:$0xff] }
  0xf8   : > { %806 = vst [vmem:[%s1325_s18 + $0x4d8] sm:$0xff] %v394_v62  ;;  %726 = vst [vmem:[%s1325_s18 + $0x258] sm:$0xff] %v362_v63 }
  0xfb   : > { %555 = vxpose.xlu1.b32.start [1/16] %v268_v0, 128  ;;  %v443_v2 = vpop.trf.xlu1  ;;  %523 = vxpose.xlu0.b32.start [1/16] %v267_v1, 128  ;;  %v411_v3 = vpop.trf.xlu0  ;;  %v300_v0 = vld [vmem:[%s1251_s4 + $0x408] sm:$0xff]  ;;  %v299_v1 = vld [vmem:[%s1251_s4 + $0x400] sm:$0xff] }
  0xfc   : > { %732 = vst [vmem:[%s1325_s18 + $0x288] sm:$0xff] %v443_v2  ;;  %652 = vst [vmem:[%s1325_s18 + $0x8] sm:$0xff] %v411_v3 }
  0xff   : > { %556 = vxpose.xlu1.b32.cont [2/16] %v270_v4, 128  ;;  %v444_v6 = vpop.trf.xlu1  ;;  %524 = vxpose.xlu0.b32.cont [2/16] %v269_v5, 128  ;;  %v412_v7 = vpop.trf.xlu0  ;;  %v302_v4 = vld [vmem:[%s1251_s4 + $0x418] sm:$0xff]  ;;  %v301_v5 = vld [vmem:[%s1251_s4 + $0x410] sm:$0xff] }
 0x100   : > { %737 = vst [vmem:[%s1325_s18 + $0x2b0] sm:$0xff] %v444_v6  ;;  %657 = vst [vmem:[%s1325_s18 + $0x30] sm:$0xff] %v412_v7 }
 0x103   : > { %557 = vxpose.xlu1.b32.cont [3/16] %v272_v8, 128  ;;  %v445_v10 = vpop.trf.xlu1  ;;  %525 = vxpose.xlu0.b32.cont [3/16] %v271_v9, 128  ;;  %v413_v11 = vpop.trf.xlu0  ;;  %v304_v8 = vld [vmem:[%s1251_s4 + $0x428] sm:$0xff]  ;;  %v303_v9 = vld [vmem:[%s1251_s4 + $0x420] sm:$0xff] }
 0x104   : > { %742 = vst [vmem:[%s1325_s18 + $0x2d8] sm:$0xff] %v445_v10  ;;  %662 = vst [vmem:[%s1325_s18 + $0x58] sm:$0xff] %v413_v11 }
 0x107   : > { %558 = vxpose.xlu1.b32.cont [4/16] %v274_v12, 128  ;;  %v446_v14 = vpop.trf.xlu1  ;;  %526 = vxpose.xlu0.b32.cont [4/16] %v273_v13, 128  ;;  %v414_v15 = vpop.trf.xlu0  ;;  %v306_v12 = vld [vmem:[%s1251_s4 + $0x438] sm:$0xff]  ;;  %v305_v13 = vld [vmem:[%s1251_s4 + $0x430] sm:$0xff] }
 0x108   : > { %747 = vst [vmem:[%s1325_s18 + $0x300] sm:$0xff] %v446_v14  ;;  %667 = vst [vmem:[%s1325_s18 + $0x80] sm:$0xff] %v414_v15 }
 0x10b   : > { %559 = vxpose.xlu1.b32.cont [5/16] %v276_v16, 128  ;;  %v447_v18 = vpop.trf.xlu1  ;;  %527 = vxpose.xlu0.b32.cont [5/16] %v275_v17, 128  ;;  %v415_v19 = vpop.trf.xlu0  ;;  %v308_v16 = vld [vmem:[%s1251_s4 + $0x448] sm:$0xff]  ;;  %v307_v17 = vld [vmem:[%s1251_s4 + $0x440] sm:$0xff] }
 0x10c   : > { %752 = vst [vmem:[%s1325_s18 + $0x328] sm:$0xff] %v447_v18  ;;  %672 = vst [vmem:[%s1325_s18 + $0xa8] sm:$0xff] %v415_v19 }
 0x10f   : > { %560 = vxpose.xlu1.b32.cont [6/16] %v278_v20, 128  ;;  %v448_v22 = vpop.trf.xlu1  ;;  %528 = vxpose.xlu0.b32.cont [6/16] %v277_v21, 128  ;;  %v416_v23 = vpop.trf.xlu0  ;;  %v310_v20 = vld [vmem:[%s1251_s4 + $0x458] sm:$0xff]  ;;  %v309_v21 = vld [vmem:[%s1251_s4 + $0x450] sm:$0xff] }
 0x110   : > { %757 = vst [vmem:[%s1325_s18 + $0x350] sm:$0xff] %v448_v22  ;;  %677 = vst [vmem:[%s1325_s18 + $0xd0] sm:$0xff] %v416_v23 }
 0x113   : > { %561 = vxpose.xlu1.b32.cont [7/16] %v280_v24, 128  ;;  %v449_v26 = vpop.trf.xlu1  ;;  %529 = vxpose.xlu0.b32.cont [7/16] %v279_v25, 128  ;;  %v417_v27 = vpop.trf.xlu0  ;;  %v312_v24 = vld [vmem:[%s1251_s4 + $0x468] sm:$0xff]  ;;  %v311_v25 = vld [vmem:[%s1251_s4 + $0x460] sm:$0xff] }
 0x114   : > { %762 = vst [vmem:[%s1325_s18 + $0x378] sm:$0xff] %v449_v26  ;;  %682 = vst [vmem:[%s1325_s18 + $0xf8] sm:$0xff] %v417_v27 }
 0x117   : > { %562 = vxpose.xlu1.b32.cont [8/16] %v282_v28, 128  ;;  %v450_v30 = vpop.trf.xlu1  ;;  %530 = vxpose.xlu0.b32.cont [8/16] %v281_v29, 128  ;;  %v418_v31 = vpop.trf.xlu0  ;;  %v314_v28 = vld [vmem:[%s1251_s4 + $0x478] sm:$0xff]  ;;  %v313_v29 = vld [vmem:[%s1251_s4 + $0x470] sm:$0xff] }
 0x118   : > { %767 = vst [vmem:[%s1325_s18 + $0x3a0] sm:$0xff] %v450_v30  ;;  %687 = vst [vmem:[%s1325_s18 + $0x120] sm:$0xff] %v418_v31 }
 0x11b   : > { %563 = vxpose.xlu1.b32.cont [9/16] %v284_v32, 128  ;;  %v451_v34 = vpop.trf.xlu1  ;;  %531 = vxpose.xlu0.b32.cont [9/16] %v283_v33, 128  ;;  %v419_v35 = vpop.trf.xlu0  ;;  %v316_v32 = vld [vmem:[%s1251_s4 + $0x488] sm:$0xff]  ;;  %v315_v33 = vld [vmem:[%s1251_s4 + $0x480] sm:$0xff] }
 0x11c   : > { %772 = vst [vmem:[%s1325_s18 + $0x3c8] sm:$0xff] %v451_v34  ;;  %692 = vst [vmem:[%s1325_s18 + $0x148] sm:$0xff] %v419_v35 }
 0x11f   : > { %564 = vxpose.xlu1.b32.cont [10/16] %v286_v36, 128  ;;  %v452_v38 = vpop.trf.xlu1  ;;  %532 = vxpose.xlu0.b32.cont [10/16] %v285_v37, 128  ;;  %v420_v39 = vpop.trf.xlu0  ;;  %v318_v36 = vld [vmem:[%s1251_s4 + $0x498] sm:$0xff]  ;;  %v317_v37 = vld [vmem:[%s1251_s4 + $0x490] sm:$0xff] }
 0x120   : > { %777 = vst [vmem:[%s1325_s18 + $0x3f0] sm:$0xff] %v452_v38  ;;  %697 = vst [vmem:[%s1325_s18 + $0x170] sm:$0xff] %v420_v39 }
 0x123   : > { %565 = vxpose.xlu1.b32.cont [11/16] %v288_v40, 128  ;;  %v453_v42 = vpop.trf.xlu1  ;;  %533 = vxpose.xlu0.b32.cont [11/16] %v287_v41, 128  ;;  %v421_v43 = vpop.trf.xlu0  ;;  %v320_v40 = vld [vmem:[%s1251_s4 + $0x4a8] sm:$0xff]  ;;  %v319_v41 = vld [vmem:[%s1251_s4 + $0x4a0] sm:$0xff] }
 0x124   : > { %782 = vst [vmem:[%s1325_s18 + $0x418] sm:$0xff] %v453_v42  ;;  %702 = vst [vmem:[%s1325_s18 + $0x198] sm:$0xff] %v421_v43 }
 0x127   : > { %566 = vxpose.xlu1.b32.cont [12/16] %v290_v44, 128  ;;  %v454_v46 = vpop.trf.xlu1  ;;  %534 = vxpose.xlu0.b32.cont [12/16] %v289_v45, 128  ;;  %v422_v47 = vpop.trf.xlu0  ;;  %v322_v44 = vld [vmem:[%s1251_s4 + $0x4b8] sm:$0xff]  ;;  %v321_v45 = vld [vmem:[%s1251_s4 + $0x4b0] sm:$0xff] }
 0x128   : > { %787 = vst [vmem:[%s1325_s18 + $0x440] sm:$0xff] %v454_v46  ;;  %707 = vst [vmem:[%s1325_s18 + $0x1c0] sm:$0xff] %v422_v47 }
 0x12b   : > { %567 = vxpose.xlu1.b32.cont [13/16] %v292_v48, 128  ;;  %v455_v50 = vpop.trf.xlu1  ;;  %535 = vxpose.xlu0.b32.cont [13/16] %v291_v49, 128  ;;  %v423_v51 = vpop.trf.xlu0  ;;  %v324_v48 = vld [vmem:[%s1251_s4 + $0x4c8] sm:$0xff]  ;;  %v323_v49 = vld [vmem:[%s1251_s4 + $0x4c0] sm:$0xff] }
 0x12c   : > { %792 = vst [vmem:[%s1325_s18 + $0x468] sm:$0xff] %v455_v50  ;;  %712 = vst [vmem:[%s1325_s18 + $0x1e8] sm:$0xff] %v423_v51 }
 0x12f   : > { %568 = vxpose.xlu1.b32.cont [14/16] %v294_v52, 128  ;;  %v456_v54 = vpop.trf.xlu1  ;;  %536 = vxpose.xlu0.b32.cont [14/16] %v293_v53, 128  ;;  %v424_v55 = vpop.trf.xlu0  ;;  %v326_v52 = vld [vmem:[%s1251_s4 + $0x4d8] sm:$0xff]  ;;  %v325_v53 = vld [vmem:[%s1251_s4 + $0x4d0] sm:$0xff] }
 0x130   : > { %797 = vst [vmem:[%s1325_s18 + $0x490] sm:$0xff] %v456_v54  ;;  %717 = vst [vmem:[%s1325_s18 + $0x210] sm:$0xff] %v424_v55 }
 0x133   : > { %569 = vxpose.xlu1.b32.cont [15/16] %v296_v56, 128  ;;  %v457_v58 = vpop.trf.xlu1  ;;  %537 = vxpose.xlu0.b32.cont [15/16] %v295_v57, 128  ;;  %v425_v59 = vpop.trf.xlu0  ;;  %v328_v56 = vld [vmem:[%s1251_s4 + $0x4e8] sm:$0xff]  ;;  %v327_v57 = vld [vmem:[%s1251_s4 + $0x4e0] sm:$0xff] }
 0x134   : > { %802 = vst [vmem:[%s1325_s18 + $0x4b8] sm:$0xff] %v457_v58  ;;  %722 = vst [vmem:[%s1325_s18 + $0x238] sm:$0xff] %v425_v59 }
 0x137   : > { %570 = vxpose.xlu1.b32.end [16/16] %v298_v60, 128  ;;  %v458_v62 = vpop.trf.xlu1  ;;  %538 = vxpose.xlu0.b32.end [16/16] %v297_v61, 128  ;;  %v426_v63 = vpop.trf.xlu0  ;;  %v330_v60 = vld [vmem:[%s1251_s4 + $0x4f8] sm:$0xff]  ;;  %v329_v61 = vld [vmem:[%s1251_s4 + $0x4f0] sm:$0xff] }
 0x138   : > { %807 = vst [vmem:[%s1325_s18 + $0x4e0] sm:$0xff] %v458_v62  ;;  %727 = vst [vmem:[%s1325_s18 + $0x260] sm:$0xff] %v426_v63 }
 0x13b   : > { %619 = vxpose.xlu1.b32.start [1/16] %v300_v0, 128  ;;  %v507_v2 = vpop.trf.xlu1  ;;  %587 = vxpose.xlu0.b32.start [1/16] %v299_v1, 128  ;;  %v475_v3 = vpop.trf.xlu0 }
 0x13c   : > { %733 = vst [vmem:[%s1325_s18 + $0x290] sm:$0xff] %v507_v2  ;;  %653 = vst [vmem:[%s1325_s18 + $0x10] sm:$0xff] %v475_v3 }
 0x13f   : > { %620 = vxpose.xlu1.b32.cont [2/16] %v302_v4, 128  ;;  %v508_v6 = vpop.trf.xlu1  ;;  %588 = vxpose.xlu0.b32.cont [2/16] %v301_v5, 128  ;;  %v476_v7 = vpop.trf.xlu0 }
 0x140   : > { %738 = vst [vmem:[%s1325_s18 + $0x2b8] sm:$0xff] %v508_v6  ;;  %658 = vst [vmem:[%s1325_s18 + $0x38] sm:$0xff] %v476_v7 }
 0x143   : > { %621 = vxpose.xlu1.b32.cont [3/16] %v304_v8, 128  ;;  %v509_v10 = vpop.trf.xlu1  ;;  %589 = vxpose.xlu0.b32.cont [3/16] %v303_v9, 128  ;;  %v477_v11 = vpop.trf.xlu0 }
 0x144   : > { %743 = vst [vmem:[%s1325_s18 + $0x2e0] sm:$0xff] %v509_v10  ;;  %663 = vst [vmem:[%s1325_s18 + $0x60] sm:$0xff] %v477_v11 }
 0x147   : > { %622 = vxpose.xlu1.b32.cont [4/16] %v306_v12, 128  ;;  %v510_v14 = vpop.trf.xlu1  ;;  %590 = vxpose.xlu0.b32.cont [4/16] %v305_v13, 128  ;;  %v478_v15 = vpop.trf.xlu0 }
 0x148   : > { %748 = vst [vmem:[%s1325_s18 + $0x308] sm:$0xff] %v510_v14  ;;  %668 = vst [vmem:[%s1325_s18 + $0x88] sm:$0xff] %v478_v15 }
 0x14b   : > { %623 = vxpose.xlu1.b32.cont [5/16] %v308_v16, 128  ;;  %v511_v18 = vpop.trf.xlu1  ;;  %591 = vxpose.xlu0.b32.cont [5/16] %v307_v17, 128  ;;  %v479_v19 = vpop.trf.xlu0 }
 0x14c   : > { %753 = vst [vmem:[%s1325_s18 + $0x330] sm:$0xff] %v511_v18  ;;  %673 = vst [vmem:[%s1325_s18 + $0xb0] sm:$0xff] %v479_v19 }
 0x14f   : > { %624 = vxpose.xlu1.b32.cont [6/16] %v310_v20, 128  ;;  %v512_v22 = vpop.trf.xlu1  ;;  %592 = vxpose.xlu0.b32.cont [6/16] %v309_v21, 128  ;;  %v480_v23 = vpop.trf.xlu0 }
 0x150   : > { %758 = vst [vmem:[%s1325_s18 + $0x358] sm:$0xff] %v512_v22  ;;  %678 = vst [vmem:[%s1325_s18 + $0xd8] sm:$0xff] %v480_v23 }
 0x153   : > { %625 = vxpose.xlu1.b32.cont [7/16] %v312_v24, 128  ;;  %v513_v26 = vpop.trf.xlu1  ;;  %593 = vxpose.xlu0.b32.cont [7/16] %v311_v25, 128  ;;  %v481_v27 = vpop.trf.xlu0 }
 0x154   : > { %763 = vst [vmem:[%s1325_s18 + $0x380] sm:$0xff] %v513_v26  ;;  %683 = vst [vmem:[%s1325_s18 + $0x100] sm:$0xff] %v481_v27 }
 0x157   : > { %626 = vxpose.xlu1.b32.cont [8/16] %v314_v28, 128  ;;  %v514_v30 = vpop.trf.xlu1  ;;  %594 = vxpose.xlu0.b32.cont [8/16] %v313_v29, 128  ;;  %v482_v31 = vpop.trf.xlu0 }
 0x158   : > { %768 = vst [vmem:[%s1325_s18 + $0x3a8] sm:$0xff] %v514_v30  ;;  %688 = vst [vmem:[%s1325_s18 + $0x128] sm:$0xff] %v482_v31 }
 0x15b   : > { %627 = vxpose.xlu1.b32.cont [9/16] %v316_v32, 128  ;;  %v515_v34 = vpop.trf.xlu1  ;;  %595 = vxpose.xlu0.b32.cont [9/16] %v315_v33, 128  ;;  %v483_v35 = vpop.trf.xlu0 }
 0x15c   : > { %773 = vst [vmem:[%s1325_s18 + $0x3d0] sm:$0xff] %v515_v34  ;;  %693 = vst [vmem:[%s1325_s18 + $0x150] sm:$0xff] %v483_v35 }
 0x15f   : > { %628 = vxpose.xlu1.b32.cont [10/16] %v318_v36, 128  ;;  %v516_v38 = vpop.trf.xlu1  ;;  %596 = vxpose.xlu0.b32.cont [10/16] %v317_v37, 128  ;;  %v484_v39 = vpop.trf.xlu0 }
 0x160   : > { %778 = vst [vmem:[%s1325_s18 + $0x3f8] sm:$0xff] %v516_v38  ;;  %698 = vst [vmem:[%s1325_s18 + $0x178] sm:$0xff] %v484_v39 }
 0x163   : > { %629 = vxpose.xlu1.b32.cont [11/16] %v320_v40, 128  ;;  %v517_v42 = vpop.trf.xlu1  ;;  %597 = vxpose.xlu0.b32.cont [11/16] %v319_v41, 128  ;;  %v485_v43 = vpop.trf.xlu0 }
 0x164   : > { %783 = vst [vmem:[%s1325_s18 + $0x420] sm:$0xff] %v517_v42  ;;  %703 = vst [vmem:[%s1325_s18 + $0x1a0] sm:$0xff] %v485_v43 }
 0x167   : > { %630 = vxpose.xlu1.b32.cont [12/16] %v322_v44, 128  ;;  %v518_v46 = vpop.trf.xlu1  ;;  %598 = vxpose.xlu0.b32.cont [12/16] %v321_v45, 128  ;;  %v486_v47 = vpop.trf.xlu0 }
 0x168   : > { %788 = vst [vmem:[%s1325_s18 + $0x448] sm:$0xff] %v518_v46  ;;  %708 = vst [vmem:[%s1325_s18 + $0x1c8] sm:$0xff] %v486_v47 }
 0x16b   : > { %631 = vxpose.xlu1.b32.cont [13/16] %v324_v48, 128  ;;  %v519_v50 = vpop.trf.xlu1  ;;  %599 = vxpose.xlu0.b32.cont [13/16] %v323_v49, 128  ;;  %v487_v51 = vpop.trf.xlu0 }
 0x16c   : > { %793 = vst [vmem:[%s1325_s18 + $0x470] sm:$0xff] %v519_v50  ;;  %713 = vst [vmem:[%s1325_s18 + $0x1f0] sm:$0xff] %v487_v51 }
 0x16f   : > { %632 = vxpose.xlu1.b32.cont [14/16] %v326_v52, 128  ;;  %v520_v54 = vpop.trf.xlu1  ;;  %600 = vxpose.xlu0.b32.cont [14/16] %v325_v53, 128  ;;  %v488_v55 = vpop.trf.xlu0 }
 0x170   : > { %798 = vst [vmem:[%s1325_s18 + $0x498] sm:$0xff] %v520_v54  ;;  %718 = vst [vmem:[%s1325_s18 + $0x218] sm:$0xff] %v488_v55 }
 0x173   : > { %633 = vxpose.xlu1.b32.cont [15/16] %v328_v56, 128  ;;  %v521_v58 = vpop.trf.xlu1  ;;  %601 = vxpose.xlu0.b32.cont [15/16] %v327_v57, 128  ;;  %v489_v59 = vpop.trf.xlu0 }
 0x174   : > { %803 = vst [vmem:[%s1325_s18 + $0x4c0] sm:$0xff] %v521_v58  ;;  %723 = vst [vmem:[%s1325_s18 + $0x240] sm:$0xff] %v489_v59 }
 0x177   : > { %634 = vxpose.xlu1.b32.end [16/16] %v330_v60, 128  ;;  %v522_v62 = vpop.trf.xlu1  ;;  %602 = vxpose.xlu0.b32.end [16/16] %v329_v61, 128  ;;  %v490_v63 = vpop.trf.xlu0 }
 0x178   : > { %808 = vst [vmem:[%s1325_s18 + $0x4e8] sm:$0xff] %v522_v62  ;;  %728 = vst [vmem:[%s1325_s18 + $0x268] sm:$0xff] %v490_v63 }
 0x17b   : > { %v571_v0 = vpop.trf.xlu1  ;;  %v539_v1 = vpop.trf.xlu0 }
 0x17c   : > { %734 = vst [vmem:[%s1325_s18 + $0x298] sm:$0xff] %v571_v0  ;;  %654 = vst [vmem:[%s1325_s18 + $0x18] sm:$0xff] %v539_v1 }
 0x17f   : > { %v572_v2 = vpop.trf.xlu1  ;;  %v540_v3 = vpop.trf.xlu0 }
 0x180   : > { %739 = vst [vmem:[%s1325_s18 + $0x2c0] sm:$0xff] %v572_v2  ;;  %659 = vst [vmem:[%s1325_s18 + $0x40] sm:$0xff] %v540_v3 }
 0x183   : > { %v573_v4 = vpop.trf.xlu1  ;;  %v541_v5 = vpop.trf.xlu0 }
 0x184   : > { %744 = vst [vmem:[%s1325_s18 + $0x2e8] sm:$0xff] %v573_v4  ;;  %664 = vst [vmem:[%s1325_s18 + $0x68] sm:$0xff] %v541_v5 }
 0x187   : > { %v574_v6 = vpop.trf.xlu1  ;;  %v542_v7 = vpop.trf.xlu0 }
 0x188   : > { %749 = vst [vmem:[%s1325_s18 + $0x310] sm:$0xff] %v574_v6  ;;  %669 = vst [vmem:[%s1325_s18 + $0x90] sm:$0xff] %v542_v7 }
 0x18b   : > { %v575_v8 = vpop.trf.xlu1  ;;  %v543_v9 = vpop.trf.xlu0 }
 0x18c   : > { %754 = vst [vmem:[%s1325_s18 + $0x338] sm:$0xff] %v575_v8  ;;  %674 = vst [vmem:[%s1325_s18 + $0xb8] sm:$0xff] %v543_v9 }
 0x18f   : > { %v576_v10 = vpop.trf.xlu1  ;;  %v544_v11 = vpop.trf.xlu0 }
 0x190   : > { %759 = vst [vmem:[%s1325_s18 + $0x360] sm:$0xff] %v576_v10  ;;  %679 = vst [vmem:[%s1325_s18 + $0xe0] sm:$0xff] %v544_v11 }
 0x193   : > { %v577_v12 = vpop.trf.xlu1  ;;  %v545_v13 = vpop.trf.xlu0 }
 0x194   : > { %764 = vst [vmem:[%s1325_s18 + $0x388] sm:$0xff] %v577_v12  ;;  %684 = vst [vmem:[%s1325_s18 + $0x108] sm:$0xff] %v545_v13 }
 0x197   : > { %v578_v14 = vpop.trf.xlu1  ;;  %v546_v15 = vpop.trf.xlu0 }
 0x198   : > { %769 = vst [vmem:[%s1325_s18 + $0x3b0] sm:$0xff] %v578_v14  ;;  %689 = vst [vmem:[%s1325_s18 + $0x130] sm:$0xff] %v546_v15 }
 0x19b   : > { %v579_v16 = vpop.trf.xlu1  ;;  %v547_v17 = vpop.trf.xlu0 }
 0x19c   : > { %774 = vst [vmem:[%s1325_s18 + $0x3d8] sm:$0xff] %v579_v16  ;;  %694 = vst [vmem:[%s1325_s18 + $0x158] sm:$0xff] %v547_v17 }
 0x19f   : > { %v580_v18 = vpop.trf.xlu1  ;;  %v548_v19 = vpop.trf.xlu0 }
 0x1a0   : > { %779 = vst [vmem:[%s1325_s18 + $0x400] sm:$0xff] %v580_v18  ;;  %699 = vst [vmem:[%s1325_s18 + $0x180] sm:$0xff] %v548_v19 }
 0x1a3   : > { %v581_v20 = vpop.trf.xlu1  ;;  %v549_v21 = vpop.trf.xlu0 }
 0x1a4   : > { %784 = vst [vmem:[%s1325_s18 + $0x428] sm:$0xff] %v581_v20  ;;  %704 = vst [vmem:[%s1325_s18 + $0x1a8] sm:$0xff] %v549_v21 }
 0x1a7   : > { %v582_v22 = vpop.trf.xlu1  ;;  %v550_v23 = vpop.trf.xlu0 }
 0x1a8   : > { %789 = vst [vmem:[%s1325_s18 + $0x450] sm:$0xff] %v582_v22  ;;  %709 = vst [vmem:[%s1325_s18 + $0x1d0] sm:$0xff] %v550_v23 }
 0x1ab   : > { %v583_v24 = vpop.trf.xlu1  ;;  %v551_v25 = vpop.trf.xlu0 }
 0x1ac   : > { %794 = vst [vmem:[%s1325_s18 + $0x478] sm:$0xff] %v583_v24  ;;  %714 = vst [vmem:[%s1325_s18 + $0x1f8] sm:$0xff] %v551_v25 }
 0x1af   : > { %v584_v26 = vpop.trf.xlu1  ;;  %v552_v27 = vpop.trf.xlu0 }
 0x1b0   : > { %799 = vst [vmem:[%s1325_s18 + $0x4a0] sm:$0xff] %v584_v26  ;;  %719 = vst [vmem:[%s1325_s18 + $0x220] sm:$0xff] %v552_v27 }
 0x1b3   : > { %v585_v28 = vpop.trf.xlu1  ;;  %v553_v29 = vpop.trf.xlu0 }
 0x1b4   : > { %804 = vst [vmem:[%s1325_s18 + $0x4c8] sm:$0xff] %v585_v28  ;;  %724 = vst [vmem:[%s1325_s18 + $0x248] sm:$0xff] %v553_v29 }
 0x1b7   : > { %v586_v30 = vpop.trf.xlu1  ;;  %v554_v31 = vpop.trf.xlu0 }
 0x1b8   : > { %809 = vst [vmem:[%s1325_s18 + $0x4f0] sm:$0xff] %v586_v30  ;;  %729 = vst [vmem:[%s1325_s18 + $0x270] sm:$0xff] %v554_v31 }
 0x1bb   : > { %v635_v32 = vpop.trf.xlu1  ;;  %v603_v33 = vpop.trf.xlu0 }
 0x1bc   : > { %735 = vst [vmem:[%s1325_s18 + $0x2a0] sm:$0xff] %v635_v32  ;;  %655 = vst [vmem:[%s1325_s18 + $0x20] sm:$0xff] %v603_v33 }
 0x1bf   : > { %v636_v34 = vpop.trf.xlu1  ;;  %v604_v35 = vpop.trf.xlu0 }
 0x1c0   : > { %740 = vst [vmem:[%s1325_s18 + $0x2c8] sm:$0xff] %v636_v34  ;;  %660 = vst [vmem:[%s1325_s18 + $0x48] sm:$0xff] %v604_v35 }
 0x1c3   : > { %v637_v36 = vpop.trf.xlu1  ;;  %v605_v37 = vpop.trf.xlu0 }
 0x1c4   : > { %745 = vst [vmem:[%s1325_s18 + $0x2f0] sm:$0xff] %v637_v36  ;;  %665 = vst [vmem:[%s1325_s18 + $0x70] sm:$0xff] %v605_v37 }
 0x1c7   : > { %v638_v38 = vpop.trf.xlu1  ;;  %v606_v39 = vpop.trf.xlu0 }
 0x1c8   : > { %750 = vst [vmem:[%s1325_s18 + $0x318] sm:$0xff] %v638_v38  ;;  %670 = vst [vmem:[%s1325_s18 + $0x98] sm:$0xff] %v606_v39 }
 0x1cb   : > { %v639_v40 = vpop.trf.xlu1  ;;  %v607_v41 = vpop.trf.xlu0 }
 0x1cc   : > { %755 = vst [vmem:[%s1325_s18 + $0x340] sm:$0xff] %v639_v40  ;;  %675 = vst [vmem:[%s1325_s18 + $0xc0] sm:$0xff] %v607_v41 }
 0x1cf   : > { %v640_v42 = vpop.trf.xlu1  ;;  %v608_v43 = vpop.trf.xlu0 }
 0x1d0   : > { %760 = vst [vmem:[%s1325_s18 + $0x368] sm:$0xff] %v640_v42  ;;  %680 = vst [vmem:[%s1325_s18 + $0xe8] sm:$0xff] %v608_v43 }
 0x1d3   : > { %v641_v44 = vpop.trf.xlu1  ;;  %v609_v45 = vpop.trf.xlu0 }
 0x1d4   : > { %765 = vst [vmem:[%s1325_s18 + $0x390] sm:$0xff] %v641_v44  ;;  %685 = vst [vmem:[%s1325_s18 + $0x110] sm:$0xff] %v609_v45 }
 0x1d7   : > { %v642_v46 = vpop.trf.xlu1  ;;  %v610_v47 = vpop.trf.xlu0 }
 0x1d8   : > { %770 = vst [vmem:[%s1325_s18 + $0x3b8] sm:$0xff] %v642_v46  ;;  %690 = vst [vmem:[%s1325_s18 + $0x138] sm:$0xff] %v610_v47 }
 0x1db   : > { %v643_v48 = vpop.trf.xlu1  ;;  %v611_v49 = vpop.trf.xlu0 }
 0x1dc   : > { %775 = vst [vmem:[%s1325_s18 + $0x3e0] sm:$0xff] %v643_v48  ;;  %695 = vst [vmem:[%s1325_s18 + $0x160] sm:$0xff] %v611_v49 }
 0x1df   : > { %v644_v50 = vpop.trf.xlu1  ;;  %v612_v51 = vpop.trf.xlu0 }
 0x1e0   : > { %780 = vst [vmem:[%s1325_s18 + $0x408] sm:$0xff] %v644_v50  ;;  %700 = vst [vmem:[%s1325_s18 + $0x188] sm:$0xff] %v612_v51 }
 0x1e3   : > { %v645_v52 = vpop.trf.xlu1  ;;  %v613_v53 = vpop.trf.xlu0 }
 0x1e4   : > { %785 = vst [vmem:[%s1325_s18 + $0x430] sm:$0xff] %v645_v52  ;;  %705 = vst [vmem:[%s1325_s18 + $0x1b0] sm:$0xff] %v613_v53 }
 0x1e7   : > { %v646_v54 = vpop.trf.xlu1  ;;  %v614_v55 = vpop.trf.xlu0 }
 0x1e8   : > { %790 = vst [vmem:[%s1325_s18 + $0x458] sm:$0xff] %v646_v54  ;;  %710 = vst [vmem:[%s1325_s18 + $0x1d8] sm:$0xff] %v614_v55 }
 0x1eb   : > { %v647_v56 = vpop.trf.xlu1  ;;  %v615_v57 = vpop.trf.xlu0 }
 0x1ec   : > { %795 = vst [vmem:[%s1325_s18 + $0x480] sm:$0xff] %v647_v56  ;;  %715 = vst [vmem:[%s1325_s18 + $0x200] sm:$0xff] %v615_v57 }
 0x1ef   : > { %v648_v58 = vpop.trf.xlu1  ;;  %v616_v59 = vpop.trf.xlu0 }
 0x1f0   : > { %800 = vst [vmem:[%s1325_s18 + $0x4a8] sm:$0xff] %v648_v58  ;;  %720 = vst [vmem:[%s1325_s18 + $0x228] sm:$0xff] %v616_v59 }
 0x1f3   : > { %v649_v60 = vpop.trf.xlu1  ;;  %v617_v61 = vpop.trf.xlu0 }
 0x1f4   : > { %805 = vst [vmem:[%s1325_s18 + $0x4d0] sm:$0xff] %v649_v60  ;;  %725 = vst [vmem:[%s1325_s18 + $0x250] sm:$0xff] %v617_v61 }
 0x1f7   : > { %v650_v62 = vpop.trf.xlu1  ;;  %v618_v63 = vpop.trf.xlu0 }
 0x1f8   : > { %810 = vst [vmem:[%s1325_s18 + $0x4f8] sm:$0xff] %v650_v62  ;;  %730 = vst [vmem:[%s1325_s18 + $0x278] sm:$0xff] %v618_v63 }
 0x1f9   : > { %1046 = shalt.err (!%p1043_p4)
}
 0x1fa   : > { %s1047_s17 = scalar_lea.hbm %s1584_s5, 20480  ;;  %s1051_s24 = scalar_lea.hbm %s1638_s1, 40960 }
 0x1fb   : > { %p1048_p6 = scmp.ne.s32.totalorder %s1584_s5, %s1047_s17  ;;  %p1052_p12 = scmp.lt.u32.totalorder %s1584_s5, %s1638_s1 }
 0x1fc   : > { %p1053_p1 = scmp.lt.u32.totalorder %s1051_s24, %s1047_s17  ;;  %p1055_p8 = scmp.lt.u32.totalorder %s1047_s17, %s1584_s5 }
 0x1fd   : > { %p1049_p7 = pnand %p1048_p6, %p1646_p9 }
 0x1fe   : > { %p1054_p3 = por %p1053_p1, %p1052_p12 }
 0x1ff   : > { %p1050_p10 = pneg %p1049_p7 }
 0x200   : > { %p1056_p11 = por %p1055_p8, %p1054_p3 }
 0x202   : > { %p1057_p0 = pnand %p1056_p11, %p1050_p10 }
 0x204   : > { %1060 = shalt.err (!%p1057_p0)
}
 0x205   : > { %s1121_s3 = smov 640   ;;  %s1122_s4 = smov 40  }
 0x206   : > { %939 = dma.vmem_to_hbm [thread:$0]  (%p1646_p9), %s1586_s28, 20480, %s1584_s5, %s812_s9, %s1121_s3, %s1121_s3, %s1122_s4  }
 0x207 PF: > { %s845_s18 = sand.u32 1, %s1095_s6   ;;  %p1647_p5 = scmp.ne.s32.totalorder %s1643_s21, 0 }
 0x208   : > { %p1648_p13 = scmp.ge.s32.totalorder %s1115_s11, 2  ;;  %s846_s25 = scalar_lea.sflag [#allocation4], %s845_s18 }
 0x20a   : > { %p946_p2 = pnand %p1648_p13, %p1647_p5 }
 0x20c   : > { %1090 = dma.done.wait (!%p946_p2), %s846_s25, 20480  }
 0x20d   : > { %1092 = vsyncadd (!%p946_p2), %s846_s25, 4294946816  ;;  %s17_s11 = sadd.s32 1, %s1115_s11   ;;  %s1649_s6 = smov %s1099_s7 }
 0x20e   : > { %p14_p4 = scmp.ge.s32.totalorder %s17_s11, 4   ;;  %s1650_s7 = smov %s1103_s8 }
 0x20f   : > { %s1651_s8 = smov %s1189_s20  ;;  %s1652_s9 = smov %s1111_s10 }
 0x210   : > { %s1653_s10 = smov %s1655_s14  ;;  %16 = sbr.rel (!%p14_p4) target bundleno = 6 (0x6), region = 69 }
 0x217   :  { %851 = vsyncpa [#allocation3], 1 }
 0x218   :  { %853 = vsyncpa [#allocation3 + $0x1], 1 }
 0x219   :  { %854 = vsyncpa [#allocation4], 1 }
 0x21a   :  { %856 = vsyncpa [#allocation4 + $0x1], 1 }

</bundles_post_ra>
